<compile_context>
chip_gen: v7x
topology: tpu7x:2x2x1
jax: 0.10.0
libtpu: 0.0.40
codegen_flags: <defaults>
</compile_context>

<pallas_src>
import functools

import jax
import jax.numpy as jnp
from jax.experimental import pallas as pl
from jax.experimental.pallas import tpu as pltpu


def _round_up(x: int, m: int) -> int:
    return ((x + m - 1) // m) * m


def decoding_fcnn_kernel(x_ref, w1_ref, b1_ref, w2_ref, b2_ref,
                         wmu_ref, bmu_ref, wlv_ref, blv_ref,
                         mu_ref, var_ref):
    """Fused MLP decoder tile: Linear+tanh, Linear+tanh, split final Linear
    writing mu and exp(logvar) directly (no in-kernel cross-lane split)."""
    x = x_ref[...]

    # hidden layer 1: Linear + tanh
    h = jnp.tanh(
        jnp.dot(x, w1_ref[...], preferred_element_type=jnp.float32) + b1_ref[...])

    # hidden layer 2: Linear + tanh
    h = jnp.tanh(
        jnp.dot(h, w2_ref[...], preferred_element_type=jnp.float32) + b2_ref[...])

    # output heads: mu and var = exp(logvar), each its own (tiny-N) matmul
    mu_ref[...] = (jnp.dot(h, wmu_ref[...], preferred_element_type=jnp.float32)
                   + bmu_ref[...])
    var_ref[...] = jnp.exp(
        jnp.dot(h, wlv_ref[...], preferred_element_type=jnp.float32) + blv_ref[...])


def prepare_params(params):
    """One-time (out of the per-call path): split the final layer into
    mu / logvar heads.  No padding is performed anymore."""
    w1, b1, w2, b2, w3, b3 = params
    full_dim = w3.shape[1] // 2
    return (w1, b1, w2, b2,
            w3[:, :full_dim], b3[:, :full_dim],
            w3[:, full_dim:], b3[:, full_dim:])


@functools.partial(jax.jit, static_argnames=("block_b",))
def decoding_fcnn_forward(x, prepared_params, *, block_b: int = 2048):
    """prepared_params = prepare_params((w1,b1,w2,b2,w3,b3)), W stored as (in,out).
    Returns (mu, var)."""
    w1, b1, w2, b2, w_mu, b_mu, w_lv, b_lv = prepared_params
    B, latent = x.shape
    h0 = w1.shape[1]
    h1 = w2.shape[1]
    full_dim = w_mu.shape[1]

    # ---- batch tiling (no feature-dim padding at all) ----
    TB = min(block_b, _round_up(B, 8))                       # big tile, mult of 8
    TB = min(TB, max(8, _round_up(pl.cdiv(B, 2), 8)))        # >=2 grid steps when
    Bp = _round_up(B, TB)                                    #  B is large (v7x TCs)
    xp = x if Bp == B else jnp.pad(x, ((0, Bp - B), (0, 0)))

    grid = (Bp // TB,)
    row_map = lambda i: (i, 0)        # streamed arrays: new batch tile per step
    const_map = lambda i: (0, 0)      # weights/biases: VMEM-resident across steps

    # advisory cost estimate (unpadded shapes) so XLA schedules the call well
    flops = 2 * Bp * (latent * h0 + h0 * h1 + 2 * h1 * full_dim)
    transcendentals = Bp * (h0 + h1 + full_dim)      # tanh, tanh, exp
    bytes_accessed = 4 * (Bp * latent + 2 * Bp * full_dim
                          + latent * h0 + h0 * h1 + 2 * h1 * full_dim
                          + h0 + h1 + 2 * full_dim)

    mu_p, var_p = pl.pallas_call(
        decoding_fcnn_kernel,
        out_shape=(
            jax.ShapeDtypeStruct((Bp, full_dim), jnp.float32),
            jax.ShapeDtypeStruct((Bp, full_dim), jnp.float32),
        ),
        grid=grid,
        in_specs=[
            pl.BlockSpec((TB, latent), row_map),       # x tile (streamed)
            pl.BlockSpec((latent, h0), const_map),     # w1 (resident)
            pl.BlockSpec((1, h0), const_map),          # b1
            pl.BlockSpec((h0, h1), const_map),         # w2
            pl.BlockSpec((1, h1), const_map),          # b2
            pl.BlockSpec((h1, full_dim), const_map),   # w_mu
            pl.BlockSpec((1, full_dim), const_map),    # b_mu
            pl.BlockSpec((h1, full_dim), const_map),   # w_logvar
            pl.BlockSpec((1, full_dim), const_map),    # b_logvar
        ],
        out_specs=(
            pl.BlockSpec((TB, full_dim), row_map),     # mu tile (streamed out)
            pl.BlockSpec((TB, full_dim), row_map),     # var tile (streamed out)
        ),
        compiler_params=pltpu.CompilerParams(
            dimension_semantics=("parallel",),   # megacore-shard batch on v7x
            vmem_limit_bytes=32 * 1024 * 1024,   # ample for TB<=2048 unpadded
        ),
        cost_estimate=pl.CostEstimate(
            flops=flops,
            transcendentals=transcendentals,
            bytes_accessed=bytes_accessed,
        ),
    )(xp, w1, b1, w2, b2, w_mu, b_mu, w_lv, b_lv)

    # strip batch padding only when it was added (fuses under jit)
    if Bp != B:
        mu_p = mu_p[:B]
        var_p = var_p[:B]
    return mu_p, var_p


def init_params(key, latent_dim, layer_description, full_dim):
    """Deterministic parameter init matching the module's shapes.
    layer_description is the hidden-layer widths (latent_dim is prepended,
    as the PyTorch __init__ does). Weights are (in, out) = W_pytorch.T."""
    dims = [latent_dim] + list(layer_description)
    params = []
    for i in range(len(dims) - 1):
        key, kw, kb = jax.random.split(key, 3)
        fan_in = dims[i]
        bound = 1.0 / jnp.sqrt(fan_in)
        w = jax.random.uniform(kw, (dims[i], dims[i + 1]), jnp.float32, -bound, bound)
        b = jax.random.uniform(kb, (1, dims[i + 1]), jnp.float32, -bound, bound)
        params += [w, b]
    key, kw, kb = jax.random.split(key, 3)
    fan_in = dims[-1]
    bound = 1.0 / jnp.sqrt(fan_in)
    w = jax.random.uniform(kw, (dims[-1], full_dim * 2), jnp.float32, -bound, bound)
    b = jax.random.uniform(kb, (1, full_dim * 2), jnp.float32, -bound, bound)
    params += [w, b]
    return tuple(params)


def reference_forward(x, params):
    """Plain-JAX reference of the PyTorch forward for verification."""
    w1, b1, w2, b2, w3, b3 = params
    h = jnp.tanh(x @ w1 + b1)
    h = jnp.tanh(h @ w2 + b2)
    y = h @ w3 + b3
    full_dim = w3.shape[1] // 2
    return y[:, :full_dim], jnp.exp(y[:, full_dim:])


if __name__ == "__main__":
    # Small shapes consistent with the module:
    #   latent_dim=8, layer_description=[32, 32], full_dim=16, nonlinearity=Tanh
    B = 8
    latent_dim = 8
    hidden = [32, 32]
    full_dim = 16

    key = jax.random.PRNGKey(0)
    key, kx = jax.random.split(key)
    x = jax.random.normal(kx, (B, latent_dim), jnp.float32)
    params = init_params(key, latent_dim, hidden, full_dim)
    prepared = prepare_params(params)   # head split hoisted out of the call path

    mu, var = decoding_fcnn_forward(x, prepared)
    mu = jax.block_until_ready(mu)
    var = jax.block_until_ready(var)

    # sanity check against plain-JAX reference
    mu_ref, var_ref = reference_forward(x, params)
    assert mu.shape == (B, full_dim) and var.shape == (B, full_dim)
    assert jnp.allclose(mu, mu_ref, atol=1e-4, rtol=1e-4)
    assert jnp.allclose(var, var_ref, atol=1e-4, rtol=1e-4)
    assert bool(jnp.all(var > 0.0))  # exp(logvar) must be positive

    # TODO(synk): kl_divergence() is a constant 0.0 scalar in the module; no kernel needed.
    print("KERNEL_OK")
</pallas_src>

<mosaic_0001>
module attributes {stable_mosaic.version = 11 : i64} {
  func.func @decoding_fcnn_kernel(%arg0: i32, %arg1: memref<8x8xf32, #tpu.memory_space<vmem>>, %arg2: memref<8x32xf32, #tpu.memory_space<vmem>>, %arg3: memref<1x32xf32, #tpu.memory_space<vmem>>, %arg4: memref<32x32xf32, #tpu.memory_space<vmem>>, %arg5: memref<1x32xf32, #tpu.memory_space<vmem>>, %arg6: memref<32x16xf32, #tpu.memory_space<vmem>>, %arg7: memref<1x16xf32, #tpu.memory_space<vmem>>, %arg8: memref<32x16xf32, #tpu.memory_space<vmem>>, %arg9: memref<1x16xf32, #tpu.memory_space<vmem>>, %arg10: memref<8x16xf32, #tpu.memory_space<vmem>>, %arg11: memref<8x16xf32, #tpu.memory_space<vmem>>) attributes {dimension_semantics = [#tpu.dimension_semantics<parallel>], iteration_bounds = array<i64: 1>, scalar_prefetch = 0 : i64, scratch_operands = 0 : i64, tpu.core_type = #tpu.core_type<tc>, window_params = [{transform_indices = @transform_0, window_bounds = array<i64: 8, 8>}, {pipeline_mode = #tpu.pipeline_mode<synchronous>, transform_indices = @transform_1, window_bounds = array<i64: 8, 32>}, {pipeline_mode = #tpu.pipeline_mode<synchronous>, transform_indices = @transform_2, window_bounds = array<i64: 1, 32>}, {pipeline_mode = #tpu.pipeline_mode<synchronous>, transform_indices = @transform_3, window_bounds = array<i64: 32, 32>}, {pipeline_mode = #tpu.pipeline_mode<synchronous>, transform_indices = @transform_4, window_bounds = array<i64: 1, 32>}, {pipeline_mode = #tpu.pipeline_mode<synchronous>, transform_indices = @transform_5, window_bounds = array<i64: 32, 16>}, {pipeline_mode = #tpu.pipeline_mode<synchronous>, transform_indices = @transform_6, window_bounds = array<i64: 1, 16>}, {pipeline_mode = #tpu.pipeline_mode<synchronous>, transform_indices = @transform_7, window_bounds = array<i64: 32, 16>}, {pipeline_mode = #tpu.pipeline_mode<synchronous>, transform_indices = @transform_8, window_bounds = array<i64: 1, 16>}, {transform_indices = @transform_9, window_bounds = array<i64: 8, 16>}, {transform_indices = @transform_10, window_bounds = array<i64: 8, 16>}]} {
    %c0 = arith.constant 0 : index
    %c0_0 = arith.constant 0 : index
    %0 = vector.load %arg1[%c0, %c0_0] : memref<8x8xf32, #tpu.memory_space<vmem>>, vector<8x8xf32>
    %c0_1 = arith.constant 0 : index
    %c0_2 = arith.constant 0 : index
    %1 = vector.load %arg2[%c0_1, %c0_2] : memref<8x32xf32, #tpu.memory_space<vmem>>, vector<8x32xf32>
    %cst = arith.constant dense<0.000000e+00> : vector<8x32xf32>
    %2 = tpu.matmul %0, %1, %cst {dimension_numbers = #tpu.dot_dimension_numbers<[1], [0], [0], [1], [0, 0, 1, 1], [], []>} : vector<8x8xf32>, vector<8x32xf32>, vector<8x32xf32> -> vector<8x32xf32>
    %c0_3 = arith.constant 0 : index
    %c0_4 = arith.constant 0 : index
    %3 = vector.load %arg3[%c0_3, %c0_4] : memref<1x32xf32, #tpu.memory_space<vmem>>, vector<1x32xf32>
    %4 = vector.broadcast %3 : vector<1x32xf32> to vector<8x32xf32>
    %5 = arith.addf %2, %4 : vector<8x32xf32>
    %6 = math.tanh %5 : vector<8x32xf32>
    %c0_5 = arith.constant 0 : index
    %c0_6 = arith.constant 0 : index
    %7 = vector.load %arg4[%c0_5, %c0_6] : memref<32x32xf32, #tpu.memory_space<vmem>>, vector<32x32xf32>
    %cst_7 = arith.constant dense<0.000000e+00> : vector<8x32xf32>
    %8 = tpu.matmul %6, %7, %cst_7 {dimension_numbers = #tpu.dot_dimension_numbers<[1], [0], [0], [1], [0, 0, 1, 1], [], []>} : vector<8x32xf32>, vector<32x32xf32>, vector<8x32xf32> -> vector<8x32xf32>
    %c0_8 = arith.constant 0 : index
    %c0_9 = arith.constant 0 : index
    %9 = vector.load %arg5[%c0_8, %c0_9] : memref<1x32xf32, #tpu.memory_space<vmem>>, vector<1x32xf32>
    %10 = vector.broadcast %9 : vector<1x32xf32> to vector<8x32xf32>
    %11 = arith.addf %8, %10 : vector<8x32xf32>
    %12 = math.tanh %11 : vector<8x32xf32>
    %c0_10 = arith.constant 0 : index
    %c0_11 = arith.constant 0 : index
    %13 = vector.load %arg6[%c0_10, %c0_11] : memref<32x16xf32, #tpu.memory_space<vmem>>, vector<32x16xf32>
    %cst_12 = arith.constant dense<0.000000e+00> : vector<8x16xf32>
    %14 = tpu.matmul %12, %13, %cst_12 {dimension_numbers = #tpu.dot_dimension_numbers<[1], [0], [0], [1], [0, 0, 1, 1], [], []>} : vector<8x32xf32>, vector<32x16xf32>, vector<8x16xf32> -> vector<8x16xf32>
    %c0_13 = arith.constant 0 : index
    %c0_14 = arith.constant 0 : index
    %15 = vector.load %arg7[%c0_13, %c0_14] : memref<1x16xf32, #tpu.memory_space<vmem>>, vector<1x16xf32>
    %16 = vector.broadcast %15 : vector<1x16xf32> to vector<8x16xf32>
    %17 = arith.addf %14, %16 : vector<8x16xf32>
    %c0_15 = arith.constant 0 : index
    %c0_16 = arith.constant 0 : index
    %18 = vector.load %arg10[%c0_15, %c0_16] : memref<8x16xf32, #tpu.memory_space<vmem>>, vector<8x16xf32>
    tpu.vector_store %arg10[%c0_15, %c0_16], %17 {strides = array<i32>} : memref<8x16xf32, #tpu.memory_space<vmem>>, vector<8x16xf32>,
    %c0_17 = arith.constant 0 : index
    %c0_18 = arith.constant 0 : index
    %19 = vector.load %arg8[%c0_17, %c0_18] : memref<32x16xf32, #tpu.memory_space<vmem>>, vector<32x16xf32>
    %cst_19 = arith.constant dense<0.000000e+00> : vector<8x16xf32>
    %20 = tpu.matmul %12, %19, %cst_19 {dimension_numbers = #tpu.dot_dimension_numbers<[1], [0], [0], [1], [0, 0, 1, 1], [], []>} : vector<8x32xf32>, vector<32x16xf32>, vector<8x16xf32> -> vector<8x16xf32>
    %c0_20 = arith.constant 0 : index
    %c0_21 = arith.constant 0 : index
    %21 = vector.load %arg9[%c0_20, %c0_21] : memref<1x16xf32, #tpu.memory_space<vmem>>, vector<1x16xf32>
    %22 = vector.broadcast %21 : vector<1x16xf32> to vector<8x16xf32>
    %23 = arith.addf %20, %22 : vector<8x16xf32>
    %24 = math.exp %23 : vector<8x16xf32>
    %c0_22 = arith.constant 0 : index
    %c0_23 = arith.constant 0 : index
    %25 = vector.load %arg11[%c0_22, %c0_23] : memref<8x16xf32, #tpu.memory_space<vmem>>, vector<8x16xf32>
    tpu.vector_store %arg11[%c0_22, %c0_23], %24 {strides = array<i32>} : memref<8x16xf32, #tpu.memory_space<vmem>>, vector<8x16xf32>,
    return
  }
  func.func @transform_0(%arg0: i32) -> (i32, i32) {
    %c0_i32 = arith.constant 0 : i32
    %c0_i32_0 = arith.constant 0 : i32
    return %arg0, %c0_i32 : i32, i32
  }
  func.func @transform_1(%arg0: i32) -> (i32, i32) {
    %c0_i32 = arith.constant 0 : i32
    %c0_i32_0 = arith.constant 0 : i32
    %c0_i32_1 = arith.constant 0 : i32
    return %c0_i32, %c0_i32_0 : i32, i32
  }
  func.func @transform_2(%arg0: i32) -> (i32, i32) {
    %c0_i32 = arith.constant 0 : i32
    %c0_i32_0 = arith.constant 0 : i32
    %c0_i32_1 = arith.constant 0 : i32
    return %c0_i32, %c0_i32_0 : i32, i32
  }
  func.func @transform_3(%arg0: i32) -> (i32, i32) {
    %c0_i32 = arith.constant 0 : i32
    %c0_i32_0 = arith.constant 0 : i32
    %c0_i32_1 = arith.constant 0 : i32
    return %c0_i32, %c0_i32_0 : i32, i32
  }
  func.func @transform_4(%arg0: i32) -> (i32, i32) {
    %c0_i32 = arith.constant 0 : i32
    %c0_i32_0 = arith.constant 0 : i32
    %c0_i32_1 = arith.constant 0 : i32
    return %c0_i32, %c0_i32_0 : i32, i32
  }
  func.func @transform_5(%arg0: i32) -> (i32, i32) {
    %c0_i32 = arith.constant 0 : i32
    %c0_i32_0 = arith.constant 0 : i32
    %c0_i32_1 = arith.constant 0 : i32
    return %c0_i32, %c0_i32_0 : i32, i32
  }
  func.func @transform_6(%arg0: i32) -> (i32, i32) {
    %c0_i32 = arith.constant 0 : i32
    %c0_i32_0 = arith.constant 0 : i32
    %c0_i32_1 = arith.constant 0 : i32
    return %c0_i32, %c0_i32_0 : i32, i32
  }
  func.func @transform_7(%arg0: i32) -> (i32, i32) {
    %c0_i32 = arith.constant 0 : i32
    %c0_i32_0 = arith.constant 0 : i32
    %c0_i32_1 = arith.constant 0 : i32
    return %c0_i32, %c0_i32_0 : i32, i32
  }
  func.func @transform_8(%arg0: i32) -> (i32, i32) {
    %c0_i32 = arith.constant 0 : i32
    %c0_i32_0 = arith.constant 0 : i32
    %c0_i32_1 = arith.constant 0 : i32
    return %c0_i32, %c0_i32_0 : i32, i32
  }
  func.func @transform_9(%arg0: i32) -> (i32, i32) {
    %c0_i32 = arith.constant 0 : i32
    %c0_i32_0 = arith.constant 0 : i32
    return %arg0, %c0_i32 : i32, i32
  }
  func.func @transform_10(%arg0: i32) -> (i32, i32) {
    %c0_i32 = arith.constant 0 : i32
    %c0_i32_0 = arith.constant 0 : i32
    return %arg0, %c0_i32 : i32, i32
  }
}

</mosaic_0001>

<bundles_post_ra>
// kernel: decoding_fcnn_forward.1
= control target key start
LH: loop header
LB: loop body
LE: loop exit
PB: predicated region body
PF: predicated region fallthrough
CT: control target
= control target key end

     0   :  { %16 = vsyncpa [#allocation3], 0  ;;  %vm45_vm0 = vcmask 64512   ;;  %v544_v2 = vmov 0.0   ;;  %vm545_vm1 = vmmov 0   ;;  %s691_s0 = inlined_call_operand.vmem [shape: f32[8,8], index: 0, kind: input, shape index: {}]   ;;  %s692_s1 = inlined_call_operand.vmem [shape: f32[8,32], index: 1, kind: input, shape index: {}]   ;;  %s693_s2 = inlined_call_operand.vmem [shape: f32[1,32], index: 2, kind: input, shape index: {}]   ;;  %s694_s3 = inlined_call_operand.vmem [shape: f32[32,32], index: 3, kind: input, shape index: {}]   ;;  %s695_s4 = inlined_call_operand.vmem [shape: f32[1,32], index: 4, kind: input, shape index: {}]   ;;  %s696_s5 = inlined_call_operand.vmem [shape: f32[32,16], index: 5, kind: input, shape index: {}]   ;;  %s697_s6 = inlined_call_operand.vmem [shape: f32[1,16], index: 6, kind: input, shape index: {}]   ;;  %s698_s7 = inlined_call_operand.vmem [shape: f32[32,16], index: 7, kind: input, shape index: {}]   ;;  %s699_s8 = inlined_call_operand.vmem [shape: f32[1,16], index: 8, kind: input, shape index: {}]   ;;  %s700_s9 = inlined_call_operand.hbm [shape: f32[8,16], index: 9, kind: output, shape index: {0}]   ;;  %s701_s10 = inlined_call_operand.hbm [shape: f32[8,16], index: 10, kind: output, shape index: {1}]  }
   0x1   :  { %v37_v0 = vld [vmem:[%s692_s1] sm:$0xff]  ;;  %429 = vmatprep.subr.mxu0 %v544_v2  ;;  %431 = vmatprep.mubr.msk.f32.mxu0 %vm545_vm1, %v544_v2 }
   0x2   :  { %v36_v1 = vld [vmem:[%s691_s0] sm:$0xff] }
   0x3   :  { %17 = vsyncpa [#allocation5], 0  ;;  %430 = vmatpush3.msra.mxu0 %v37_v0  ;;  %442 = vmatprep.mubr.msk.f32.mxu1 %vm545_vm1, %v544_v2  ;;  %v120_v3 = vld [vmem:[%s694_s3] sm:$0xff]  ;;  %v121_v4 = vld [vmem:[%s694_s3 + $0x8] sm:$0xff]  ;;  %v546_v6 = vmov 0.0|0.0   ;;  %vm131_vm2 = vcmask 261120  }
   0x4   :  { %432 = vmatmul.mubr.msk.f32.vlgmr.msra.gmra.mrb[0].mxu0 %vm45_vm0, %v36_v1  ;;  %v122_v5 = vld [vmem:[%s694_s3 + $0x10] sm:$0xff]  ;;  %467 = vmatprep.subr.bf16.mxu1 %v546_v6  ;;  %v468_v7 = vpack.c.bf16 %v121_v4, %v120_v3  ;;  %v123_v8 = vld [vmem:[%s694_s3 + $0x18] sm:$0xff]  ;;  %v404_v10 = vld [vmem:[%s693_s2] ss:$0 sm:$0xff]  ;;  %s547_s21 = smov [#allocation2]   ;;  %vm290_vm3 = vcmask 130048  }
   0x5   :  { %453 = vmatprep.mubr.msk.f32.mxu0 %vm545_vm1, %v544_v2  ;;  %473 = vmatprep.subr.bf16.mxu0 %v546_v6  ;;  %v471_v9 = vpack.c.bf16 %v123_v8, %v122_v5  ;;  %v206_v15 = vld [vmem:[%s696_s5] sm:$0xff]  ;;  %v207_v16 = vld [vmem:[%s696_s5 + $0x8] sm:$0xff]  ;;  %v208_v20 = vld [vmem:[%s696_s5 + $0x10] sm:$0xff]  ;;  %s382_s22 = sshll.u32 %s547_s21, 4  ;;  %s383_s22 = int_to_ptr.vmem [resolvable:$true] %s382_s22 }
   0x6   :  { %469 = vmatpush3.bf16.msra.mxu1 %v468_v7  ;;  %v292_v17 = vld [vmem:[%s698_s7] sm:$0xff]  ;;  %v474_v18 = vpack.c.bf16 %v207_v16, %v206_v15  ;;  %v293_v19 = vld [vmem:[%s698_s7 + $0x8] sm:$0xff]  ;;  %v209_v21 = vld [vmem:[%s696_s5 + $0x18] sm:$0xff]  ;;  %p501_p1 = scmp.lt.s32.totalorder %s383_s22, %s383_s22 }
   0x7   :  { %470 = vmatprep.subr.bf16.mxu1 %v546_v6  ;;  %v480_v22 = vpack.c.bf16 %v293_v19, %v292_v17  ;;  %v294_v23 = vld [vmem:[%s698_s7 + $0x10] sm:$0xff]  ;;  %v295_v24 = vld [vmem:[%s698_s7 + $0x18] sm:$0xff]  ;;  %v477_v25 = vpack.c.bf16 %v209_v21, %v208_v20  ;;  %v406_v27 = vld [vmem:[%s695_s4] ss:$0 sm:$0xff]  ;;  %s496_s4 = scalar_lea.vmem %s383_s22, 128 }
   0x8   :  { %475 = vmatpush3.bf16.msra.mxu0 %v474_v18  ;;  %v483_v26 = vpack.c.bf16 %v295_v24, %v294_v23  ;;  %v408_v32 = vld [vmem:[%s697_s6] ss:$0 sm:$0xff]  ;;  %p497_p0 = scmp.ne.s32.totalorder %s383_s22, %s496_s4  ;;  %p502_p2 = scmp.lt.s32.totalorder %s496_s4, %s496_s4 }
   0x9   :  { %476 = vmatprep.subr.bf16.mxu0 %v546_v6  ;;  %v410_v33 = vld [vmem:[%s699_s8] ss:$0 sm:$0xff] }
   0xa   :  { %472 = vmatpush3.bf16.msra.mxu1 %v471_v9  ;;  %p503_p3 = por %p502_p2, %p501_p1 }
   0xb   :  { %479 = vmatprep.subr.bf16.mxu1 %v546_v6 }
   0xc   :  { %478 = vmatpush3.bf16.msra.mxu0 %v477_v25  ;;  %p504_p4 = pnand %p503_p3, %p497_p0 }
  0xd7   :  { %v115_v11 = vpop.f32.mrb[0].mxu0 }
  0xd8   :  { %v116_v12 = vadd.f32 %v404_v10, %v115_v11  ;;  %v433_v13 = vpop.f32.mrb[1].mxu0 }
  0xda   :  { %490 = vtanh.f32 %v116_v12 }
  0xe4   :  { %v491_v14 = vpop.eup %490 }
  0xe5   :  { %443 = vmatmul.mubr.msk.f32.vlgmr.msra.gmra.mrb[0].mxu1 %vm131_vm2, %v491_v14 }
  0xe6   :  { %464 = vmatprep.mubr.msk.f32.mxu1 %vm545_vm1, %v544_v2  ;;  %481 = vmatpush3.bf16.msra.mxu1 %v480_v22 }
  0xe7   :  { %482 = vmatprep.subr.bf16.mxu1 %v546_v6 }
  0xea   :  { %484 = vmatpush3.bf16.msra.mxu1 %v483_v26 }
 0x1b8   :  { %v201_v28 = vpop.f32.mrb[0].mxu1 }
 0x1b9   :  { %v202_v29 = vadd.f32 %v406_v27, %v201_v28  ;;  %v444_v30 = vpop.f32.mrb[1].mxu1 }
 0x1bb   :  { %492 = vtanh.f32 %v202_v29 }
 0x1c5   :  { %v493_v31 = vpop.eup %492 }
 0x1c6   :  { %454 = vmatmul.mubr.msk.f32.vlgmr.msra.gmra.mrb[2].mxu0 %vm131_vm2, %v493_v31  ;;  %465 = vmatmul.mubr.msk.f32.vlgmr.msra.gmra.mrb[2].mxu1 %vm131_vm2, %v493_v31 }
 0x299   :  { %v286_v34 = vpop.f32.mrb[2].mxu0  ;;  %v369_v35 = vpop.f32.mrb[2].mxu1 }
 0x29a   :  { %v287_v36 = vadd.f32 %v408_v32, %v286_v34  ;;  %v370_v37 = vadd.f32 %v410_v33, %v369_v35  ;;  %v455_v38 = vpop.f32.mrb[3].mxu0  ;;  %v466_v39 = vpop.f32.mrb[3].mxu1 }
 0x29c   :  { %v373_v40 = vmul.f32 1.442695, %v370_v37  ;;  %291 = vst.msk [vmem:[#allocation2] sm:$0xff] %vm290_vm3, %v287_v36 }
 0x29d   :  { %507 = shalt.err (!%p504_p4)
}
 0x29e   :  { %s508_s23 = scalar_lea.hbm %s700_s9, 128 }
 0x29f   :  { %p509_p5 = scmp.ne.s32.totalorder %s700_s9, %s508_s23  ;;  %p512_p6 = scmp.lt.u32.totalorder %s508_s23, %s700_s9 }
 0x2a1   :  { %p514_p7 = pnand %p512_p6, %p509_p5 }
 0x2a3   :  { %517 = shalt.err (!%p514_p7)
}
 0x2a4   :  { %385 = dma.vmem_to_hbm [thread:$0]  %s383_s22, 128, %s700_s9, [#allocation3]   ;;  %494 = vpow2.f32 %v373_v40 }
 0x2a5   :  { %s548_s2 = smov [#allocation4]  }
 0x2a6   :  { %s392_s29 = sshll.u32 %s548_s2, 4  ;;  %s393_s29 = int_to_ptr.vmem [resolvable:$true] %s392_s29 }
 0x2a7   :  { %s518_s30 = scalar_lea.vmem %s393_s29, 128  ;;  %p523_p9 = scmp.lt.s32.totalorder %s393_s29, %s393_s29 }
 0x2a8   :  { %p519_p8 = scmp.ne.s32.totalorder %s393_s29, %s518_s30  ;;  %p524_p10 = scmp.lt.s32.totalorder %s518_s30, %s518_s30 }
 0x2aa   :  { %p525_p11 = por %p524_p10, %p523_p9 }
 0x2ac   :  { %p526_p12 = pnand %p525_p11, %p519_p8 }
 0x2ae   :  { %v495_v41 = vpop.eup %494 }
 0x2af   :  { %375 = vst.msk [vmem:[#allocation4] sm:$0xff] %vm290_vm3, %v495_v41 }
 0x2b0   :  { %529 = shalt.err (!%p526_p12)
}
 0x2b1   :  { %s530_s13 = scalar_lea.hbm %s701_s10, 128 }
 0x2b2   :  { %p531_p13 = scmp.ne.s32.totalorder %s701_s10, %s530_s13  ;;  %p534_p0 = scmp.lt.u32.totalorder %s530_s13, %s701_s10 }
 0x2b4   :  { %p536_p1 = pnand %p534_p0, %p531_p13 }
 0x2b6   :  { %539 = shalt.err (!%p536_p1)
}
 0x2b7   :  { %395 = dma.vmem_to_hbm [thread:$0]  %s393_s29, 128, %s701_s10, [#allocation5]  }
 0x2b8   :  { %540 = dma.done.wait [#allocation3], 128  }
 0x2b9   :  { %541 = vsyncadd [#allocation3], 4294967168 }
 0x2ba   :  { %542 = dma.done.wait [#allocation5], 128  }
 0x2bb   :  { %543 = vsyncadd [#allocation5], 4294967168 }
 0x2bc   :  { %402 = vsyncpa [#allocation3], 1 }
 0x2bd   :  { %403 = vsyncpa [#allocation5], 1 }

</bundles_post_ra>
